<compile_context>
chip_gen: v7x
topology: tpu7x:2x2x1
jax: 0.10.0
libtpu: 0.0.40
codegen_flags: <defaults>
</compile_context>

<pallas_src>
import jax
import jax.numpy as jnp
from jax.experimental import pallas as pl
from jax.experimental.pallas import tpu as pltpu

HIDDEN = 32

_VMEM_LIMIT_BYTES = 48 * 1024 * 1024          # safe on v5e/v6e (128 MiB) and v7x (64 MiB/TC)
_TILE_BUDGET_BYTES = int(0.75 * _VMEM_LIMIT_BYTES)
_MAX_TILE_B = 65536                           # lane-tile cap (multiple of 128)


def _round_up(n, m):
    return ((n + m - 1) // m) * m


def _choose_tile_b(b_pad, d, h):
    """Largest batch (lane) tile fitting the VMEM budget, split into >=2 even
    tiles when possible so v7x's two TensorCores both get work."""
    # Per-batch-column f32 bytes resident at once:
    #   2*D   : double-buffered x column
    #   3*H   : [H, tb] intermediates (dot result, ReLU, h*w2)
    #   2     : double-buffered [1, tb] output
    per_col = 4 * (2 * d + 3 * h + 2)
    fixed = 2 * 4 * (h * d + 2 * h + 1)        # resident weights/biases (double-buffered)
    tb_max = max(128, ((_TILE_BUDGET_BYTES - fixed) // per_col) // 128 * 128)
    tb_max = min(tb_max, _MAX_TILE_B)

    n_tiles = max(2, pl.cdiv(b_pad, tb_max))
    if n_tiles % 2:
        n_tiles += 1                           # even tile count for 2-TC chips
    tb = _round_up(pl.cdiv(b_pad, n_tiles), 128)
    return max(128, min(tb, tb_max, b_pad))


def _mlp_kernel(x_ref, w1_ref, b1_ref, w2_ref, b2_ref, o_ref):
    # x_ref:  [D, TILE_B]   (batch on lanes)
    # w1_ref: [32, D]       b1_ref: [32, 1]
    # w2_ref: [32, 1]       b2_ref: [1, 1]
    # o_ref:  [1, TILE_B]
    x = x_ref[...]
    h = jnp.dot(w1_ref[...], x, preferred_element_type=jnp.float32)   # [32, TILE_B] MXU
    h = jnp.maximum(h + b1_ref[...], 0.0)                             # bias bcast over lanes + ReLU
    # Second linear (hidden=32 -> 1): VPU multiply + sublane (XLU) reduce instead
    # of a 1-output-column MXU matmul.
    o = jnp.sum(h * w2_ref[...], axis=0, keepdims=True) + b2_ref[...]  # [1, TILE_B]
    o_ref[...] = o.astype(o_ref.dtype)


@jax.jit
def cf_decision_forward(x, w1, b1, w2, b2):
    """Forward pass of CFdecision.

    x:  [B, D] f32
    w1: [32, D], b1: [32]   (nn.Linear(input_dim, 32))
    w2: [1, 32], b2: [1]    (nn.Linear(32, 1))
    returns [B, 1] f32
    """
    B, D = x.shape
    H = w1.shape[0]

    b_pad = _round_up(B, 128)                  # pad only to a lane multiple, never to tb
    tb = _choose_tile_b(b_pad, D, H)
    n_tiles = pl.cdiv(b_pad, tb)               # ragged last tile is masked by Pallas

    if b_pad != B:
        x = jnp.pad(x, ((0, b_pad - B), (0, 0)))
    x_t = x.T.astype(jnp.float32)              # [D, b_pad] feature-major (batch on lanes)

    w1_c = w1.astype(jnp.float32)              # [32, D]
    b1_c = b1.reshape(H, 1).astype(jnp.float32)
    w2_c = w2.reshape(H, 1).astype(jnp.float32)  # transposed [1, 32]
    b2_c = b2.reshape(1, 1).astype(jnp.float32)

    cost = pl.CostEstimate(
        flops=2 * H * D * B + 6 * H * B,
        transcendentals=0,
        bytes_accessed=4 * (B * D + B + H * D + 2 * H + 1),
    )

    out = pl.pallas_call(
        _mlp_kernel,
        out_shape=jax.ShapeDtypeStruct((1, b_pad), jnp.float32),
        grid_spec=pltpu.PrefetchScalarGridSpec(
            num_scalar_prefetch=0,
            grid=(n_tiles,),
            in_specs=[
                pl.BlockSpec((D, tb), lambda i: (0, i)),      # x tile: batch on lanes
                pl.BlockSpec((H, D), lambda i: (0, 0)),       # w1 resident
                pl.BlockSpec((H, 1), lambda i: (0, 0)),       # b1 resident
                pl.BlockSpec((H, 1), lambda i: (0, 0)),       # w2 resident
                pl.BlockSpec((1, 1), lambda i: (0, 0)),       # b2 resident
            ],
            out_specs=pl.BlockSpec((1, tb), lambda i: (0, i)),  # lane-dense store
        ),
        compiler_params=pltpu.CompilerParams(
            dimension_semantics=("parallel",),                 # megacore split on v7x
            vmem_limit_bytes=_VMEM_LIMIT_BYTES,
            allow_input_fusion=[True, False, False, False, False],  # fuse pad/transpose of x
        ),
        cost_estimate=cost,
    )(x_t, w1_c, b1_c, w2_c, b2_c)

    return out[0, :B].reshape(B, 1)


def init_params(key, input_dim, hidden=HIDDEN):
    # Deterministic init mirroring nn.Linear shapes:
    #   layer0: weight (32, input_dim), bias (32,)
    #   layer2: weight (1, 32),        bias (1,)
    k1, k2, k3, k4 = jax.random.split(key, 4)
    bound1 = 1.0 / jnp.sqrt(input_dim)
    bound2 = 1.0 / jnp.sqrt(hidden)
    w1 = jax.random.uniform(k1, (hidden, input_dim), jnp.float32, -bound1, bound1)
    b1 = jax.random.uniform(k2, (hidden,), jnp.float32, -bound1, bound1)
    w2 = jax.random.uniform(k3, (1, hidden), jnp.float32, -bound2, bound2)
    b2 = jax.random.uniform(k4, (1,), jnp.float32, -bound2, bound2)
    return w1, b1, w2, b2


def _reference(x, w1, b1, w2, b2):
    return jnp.maximum(x @ w1.T + b1, 0.0) @ w2.T + b2


if __name__ == "__main__":
    key = jax.random.PRNGKey(0)
    kx, kx2, kx3, kp = jax.random.split(key, 4)

    D = 16
    w1, b1, w2, b2 = init_params(kp, D)

    # Small case consistent with the module (B=8, input_dim=16) -> single tile,
    # ragged in both directions (B < 128).
    x_small = jax.random.normal(kx, (8, D), jnp.float32)
    out_small = jax.block_until_ready(cf_decision_forward(x_small, w1, b1, w2, b2))
    ref_small = _reference(x_small, w1, b1, w2, b2)
    assert out_small.shape == (8, 1)
    assert jnp.allclose(out_small, ref_small, atol=1e-5, rtol=1e-5)

    # Non-multiple batch: pads to 384, tb=256 -> 2 tiles with a ragged last tile.
    x_mid = jax.random.normal(kx2, (300, D), jnp.float32)
    out_mid = jax.block_until_ready(cf_decision_forward(x_mid, w1, b1, w2, b2))
    ref_mid = _reference(x_mid, w1, b1, w2, b2)
    assert out_mid.shape == (300, 1)
    assert jnp.allclose(out_mid, ref_mid, atol=1e-5, rtol=1e-5)

    # Larger batch to exercise the big-tile path (even 2-tile split, ragged tail).
    x_big = jax.random.normal(kx3, (20000, D), jnp.float32)
    out_big = jax.block_until_ready(cf_decision_forward(x_big, w1, b1, w2, b2))
    ref_big = _reference(x_big, w1, b1, w2, b2)
    assert out_big.shape == (20000, 1)
    assert jnp.allclose(out_big, ref_big, atol=1e-5, rtol=1e-5)

    print("KERNEL_OK")
</pallas_src>

<mosaic_0001>
module attributes {stable_mosaic.version = 11 : i64} {
  func.func @_mlp_kernel(%arg0: i32, %arg1: memref<16x128xf32, #tpu.memory_space<vmem>>, %arg2: memref<32x16xf32, #tpu.memory_space<vmem>>, %arg3: memref<32x1xf32, #tpu.memory_space<vmem>>, %arg4: memref<32x1xf32, #tpu.memory_space<vmem>>, %arg5: memref<1x1xf32, #tpu.memory_space<vmem>>, %arg6: memref<1x128xf32, #tpu.memory_space<vmem>>) attributes {dimension_semantics = [#tpu.dimension_semantics<parallel>], iteration_bounds = array<i64: 1>, scalar_prefetch = 0 : i64, scratch_operands = 0 : i64, tpu.core_type = #tpu.core_type<tc>, window_params = [{transform_indices = @transform_0, window_bounds = array<i64: 16, 128>}, {pipeline_mode = #tpu.pipeline_mode<synchronous>, transform_indices = @transform_1, window_bounds = array<i64: 32, 16>}, {pipeline_mode = #tpu.pipeline_mode<synchronous>, transform_indices = @transform_2, window_bounds = array<i64: 32, 1>}, {pipeline_mode = #tpu.pipeline_mode<synchronous>, transform_indices = @transform_3, window_bounds = array<i64: 32, 1>}, {pipeline_mode = #tpu.pipeline_mode<synchronous>, transform_indices = @transform_4, window_bounds = array<i64: 1, 1>}, {transform_indices = @transform_5, window_bounds = array<i64: 1, 128>}]} {
    %c0 = arith.constant 0 : index
    %c0_0 = arith.constant 0 : index
    %0 = vector.load %arg1[%c0, %c0_0] : memref<16x128xf32, #tpu.memory_space<vmem>>, vector<16x128xf32>
    %c0_1 = arith.constant 0 : index
    %c0_2 = arith.constant 0 : index
    %1 = vector.load %arg2[%c0_1, %c0_2] : memref<32x16xf32, #tpu.memory_space<vmem>>, vector<32x16xf32>
    %cst = arith.constant dense<0.000000e+00> : vector<32x128xf32>
    %2 = tpu.matmul %1, %0, %cst {dimension_numbers = #tpu.dot_dimension_numbers<[1], [0], [0], [1], [0, 0, 1, 1], [], []>} : vector<32x16xf32>, vector<16x128xf32>, vector<32x128xf32> -> vector<32x128xf32>
    %c0_3 = arith.constant 0 : index
    %c0_4 = arith.constant 0 : index
    %3 = vector.load %arg3[%c0_3, %c0_4] : memref<32x1xf32, #tpu.memory_space<vmem>>, vector<32x1xf32>
    %4 = vector.broadcast %3 : vector<32x1xf32> to vector<32x128xf32>
    %5 = arith.addf %2, %4 : vector<32x128xf32>
    %cst_5 = arith.constant 0.000000e+00 : f32
    %6 = vector.broadcast %cst_5 : f32 to vector<32x128xf32>
    %7 = arith.maximumf %5, %6 : vector<32x128xf32>
    %c0_6 = arith.constant 0 : index
    %c0_7 = arith.constant 0 : index
    %8 = vector.load %arg4[%c0_6, %c0_7] : memref<32x1xf32, #tpu.memory_space<vmem>>, vector<32x1xf32>
    %9 = vector.broadcast %8 : vector<32x1xf32> to vector<32x128xf32>
    %10 = arith.mulf %7, %9 : vector<32x128xf32>
    %cst_8 = arith.constant dense<0.000000e+00> : vector<128xf32>
    %11 = vector.multi_reduction <add>, %10, %cst_8 [0] : vector<32x128xf32> to vector<128xf32>
    %12 = vector.shape_cast %11 : vector<128xf32> to vector<1x128xf32>
    %c0_9 = arith.constant 0 : index
    %c0_10 = arith.constant 0 : index
    %13 = vector.load %arg5[%c0_9, %c0_10] : memref<1x1xf32, #tpu.memory_space<vmem>>, vector<1x1xf32>
    %14 = vector.broadcast %13 : vector<1x1xf32> to vector<1x128xf32>
    %15 = arith.addf %12, %14 : vector<1x128xf32>
    %c0_11 = arith.constant 0 : index
    %c0_12 = arith.constant 0 : index
    %16 = vector.load %arg6[%c0_11, %c0_12] : memref<1x128xf32, #tpu.memory_space<vmem>>, vector<1x128xf32>
    tpu.vector_store %arg6[%c0_11, %c0_12], %15 {strides = array<i32>} : memref<1x128xf32, #tpu.memory_space<vmem>>, vector<1x128xf32>,
    return
  }
  func.func @transform_0(%arg0: i32) -> (i32, i32) {
    %c0_i32 = arith.constant 0 : i32
    %c0_i32_0 = arith.constant 0 : i32
    return %c0_i32, %arg0 : i32, i32
  }
  func.func @transform_1(%arg0: i32) -> (i32, i32) {
    %c0_i32 = arith.constant 0 : i32
    %c0_i32_0 = arith.constant 0 : i32
    %c0_i32_1 = arith.constant 0 : i32
    return %c0_i32, %c0_i32_0 : i32, i32
  }
  func.func @transform_2(%arg0: i32) -> (i32, i32) {
    %c0_i32 = arith.constant 0 : i32
    %c0_i32_0 = arith.constant 0 : i32
    %c0_i32_1 = arith.constant 0 : i32
    return %c0_i32, %c0_i32_0 : i32, i32
  }
  func.func @transform_3(%arg0: i32) -> (i32, i32) {
    %c0_i32 = arith.constant 0 : i32
    %c0_i32_0 = arith.constant 0 : i32
    %c0_i32_1 = arith.constant 0 : i32
    return %c0_i32, %c0_i32_0 : i32, i32
  }
  func.func @transform_4(%arg0: i32) -> (i32, i32) {
    %c0_i32 = arith.constant 0 : i32
    %c0_i32_0 = arith.constant 0 : i32
    %c0_i32_1 = arith.constant 0 : i32
    return %c0_i32, %c0_i32_0 : i32, i32
  }
  func.func @transform_5(%arg0: i32) -> (i32, i32) {
    %c0_i32 = arith.constant 0 : i32
    %c0_i32_0 = arith.constant 0 : i32
    return %c0_i32, %arg0 : i32, i32
  }
}

</mosaic_0001>

<bundles_post_ra>
// kernel: cf_decision_forward.2
= control target key start
LH: loop header
LB: loop body
LE: loop exit
PB: predicated region body
PF: predicated region fallthrough
CT: control target
= control target key end

     0   :  { %v25_v2 = vlaneseq  ;;  %vm72_vm0 = vcmask 130048   ;;  %v257_v6 = vmov 0   ;;  %s350_s0 = inlined_call_operand.vmem [shape: f32[32,16], index: 0, kind: input, shape index: {}]   ;;  %s351_s1 = inlined_call_operand.vmem [shape: f32[32,1], index: 1, kind: input, shape index: {}]   ;;  %s352_s2 = inlined_call_operand.vmem [shape: f32[32,1], index: 2, kind: input, shape index: {}]   ;;  %s353_s3 = inlined_call_operand.<no memory space> [shape: f32[1,1], index: 3, kind: input, shape index: {}]   ;;  %s354_s4 = inlined_call_operand.vmem [shape: f32[8,16], index: 4, kind: input, shape index: {}]   ;;  %s355_s5 = inlined_call_operand.<no memory space> [shape: f32[], index: 5, kind: input, shape index: {}]   ;;  %s356_s6 = inlined_call_operand.vmem [shape: f32[1,128], index: 6, kind: output, shape index: {}]  }
   0x1   :  { %v11_v0 = vstv %s355_s5  ;;  %v12_v1 = vstv %s353_s3  ;;  %v44_v3 = vld [vmem:[%s350_s0] sm:$0xff]  ;;  %v46_v5 = vld [vmem:[%s350_s0 + $0x10] sm:$0xff]  ;;  %255 = vset.pattern.permute.xlu0 %v257_v6  ;;  %256 = vset.pattern.permute.xlu1 %v257_v6 }
   0x2   :  { %13 = vst [vmem:[#allocation7] sm:$0x1] %v12_v1  ;;  %v24_v4 = vld [vmem:[%s354_s4] sm:$0xff]  ;;  %242 = vmatprep.mubr.msk.f32.mxu0 %vm72_vm0, %v44_v3  ;;  %v26_v7 = vand.u32 127, %v25_v2  ;;  %v227_v8 = vld [vmem:[%s354_s4 + $0x8] sm:$0xff]  ;;  %245 = vmatprep.mubr.msk.f32.mxu1 %vm72_vm0, %v46_v5  ;;  %v50_v10 = vld [vmem:[%s351_s1 + $0x10] sm:$0xff] }
   0x3   :  { %v48_v9 = vld [vmem:[%s351_s1] sm:$0xff]  ;;  %64 = vperm.xlu1 %256, %v50_v10   ;;  %v49_v11 = vld [vmem:[%s351_s1 + $0x8] sm:$0xff]  ;;  %v51_v12 = vld [vmem:[%s351_s1 + $0x18] sm:$0xff]  ;;  %v218_v51 = vshrl.u32 %v25_v2, 7 }
   0x4   :  { %54 = vperm.xlu0 %255, %v48_v9   ;;  %vm28_vm1 = vcmp.lt.s32.totalorder %v26_v7, 8  ;;  %v174_v16 = vld [vmem:[%s352_s2] sm:$0xff]  ;;  %v175_v17 = vld [vmem:[%s352_s2 + $0x8] sm:$0xff]  ;;  %v47_v19 = vld [vmem:[%s350_s0 + $0x18] sm:$0xff] }
   0x5   :  { %v29_v13 = vsel %vm28_vm1, %v24_v4, %v11_v0  ;;  %v38_v14 = vsel %vm28_vm1, %v227_v8, %v11_v0  ;;  %v45_v18 = vld [vmem:[%s350_s0 + $0x8] sm:$0xff]  ;;  %v176_v20 = vld [vmem:[%s352_s2 + $0x10] sm:$0xff]  ;;  %v177_v21 = vld [vmem:[%s352_s2 + $0x18] sm:$0xff]  ;;  %v219_v54 = vsub.s32 0, %v218_v51 }
   0x6   :  { %v248_v15 = vpack.c.bf16 %v38_v14, %v29_v13 }
   0x7   :  { %69 = vperm.xlu1 %256, %v51_v12  }
   0x8   :  { %59 = vperm.xlu0 %255, %v49_v11   ;;  %249 = vmatprep.subr.bf16.mxu0 %v248_v15 }
   0x9   :  { %252 = vmatprep.subr.bf16.mxu1 %v248_v15  ;;  %251 = vmatpush3.bf16.msra.mxu0 %v248_v15  ;;  %v211_v22 = vld [vmem:[#allocation7] sm:$0x1] }
   0xa   :  { %253 = vmatpush3.bf16.msra.mxu1 %v248_v15 }
   0xb   :  { %185 = vperm.xlu1 %256, %v175_v17  }
   0xc   :  { %180 = vperm.xlu0 %255, %v174_v16   ;;  %243 = vmatmul.mubr.msk.f32.vlgmr.msra.gmra.mrb[0].mxu0 %vm72_vm0, %v45_v18 }
   0xd   :  { %246 = vmatmul.mubr.msk.f32.vlgmr.msra.gmra.mrb[0].mxu1 %vm72_vm0, %v47_v19 }
   0xf   :  { %195 = vperm.xlu1 %256, %v177_v21  }
  0x10   :  { %190 = vperm.xlu0 %255, %v176_v20  }
  0x14   :  { %214 = vperm.xlu0 %255, %v211_v22  }
  0x82   :  { %v65_v24 = vpop.permute.xlu1 %64 }
  0x83   :  { %v55_v23 = vpop.permute.xlu0 %54 }
  0x86   :  { %v70_v26 = vpop.permute.xlu1 %69 }
  0x87   :  { %v60_v25 = vpop.permute.xlu0 %59 }
  0x8a   :  { %v186_v36 = vpop.permute.xlu1 %185 }
  0x8b   :  { %v181_v27 = vpop.permute.xlu0 %180 }
  0x8e   :  { %v196_v46 = vpop.permute.xlu1 %195 }
  0x8f   :  { %v191_v43 = vpop.permute.xlu0 %190 }
  0x93   :  { %v215_v56 = vpop.permute.xlu0 %214 }
  0x94   :  { %v220_v58 = vrot.slane %v215_v56, %v219_v54 }
  0xdf   :  { %v244_v28 = vpop.f32.mrb[0].mxu0 }
  0xe0   :  { %v247_v29 = vpop.f32.mrb[0].mxu1  ;;  %v157_v30 = vadd.f32 %v244_v28, %v60_v25  ;;  %v151_v31 = vpop.f32.mrb[1].mxu0 }
  0xe1   :  { %v161_v32 = vpop.f32.mrb[1].mxu1  ;;  %v167_v33 = vadd.f32 %v247_v29, %v70_v26  ;;  %v152_v34 = vadd.f32 %v151_v31, %v55_v23 }
  0xe2   :  { %v162_v35 = vadd.f32 %v161_v32, %v65_v24  ;;  %v171_v37 = vmax.f32 %v157_v30, 0.0 }
  0xe3   :  { %v170_v38 = vmax.f32 %v152_v34, 0.0  ;;  %v173_v41 = vmax.f32 %v167_v33, 0.0 }
  0xe4   :  { %v172_v39 = vmax.f32 %v162_v35, 0.0  ;;  %v199_v40 = vmul.f32 %v186_v36, %v171_v37 }
  0xe5   :  { %v198_v42 = vmul.f32 %v181_v27, %v170_v38  ;;  %v201_v47 = vmul.f32 %v196_v46, %v173_v41 }
  0xe6   :  { %v200_v45 = vmul.f32 %v191_v43, %v172_v39 }
  0xe7   :  { %v202_v44 = vadd.f32 %v199_v40, %v198_v42 }
  0xe9   :  { %v203_v48 = vadd.f32 %v202_v44, %v200_v45 }
  0xeb   :  { %v204_v49 = vadd.f32 %v203_v48, %v201_v47 }
  0xed   :  { %v205_v50 = vrot.slane %v204_v49, 4 }
  0xef   :  { %v206_v52 = vadd.f32 %v205_v50, %v204_v49 }
  0xf1   :  { %v207_v53 = vrot.slane %v206_v52, 2 }
  0xf3   :  { %v208_v55 = vadd.f32 %v207_v53, %v206_v52 }
  0xf5   :  { %v209_v57 = vrot.slane %v208_v55, 1 }
  0xf7   :  { %v210_v59 = vadd.f32 %v209_v57, %v208_v55 }
  0xf9   :  { %v221_v60 = vadd.f32 %v220_v58, %v210_v59 }
  0xfb   :  { %222 = vst [vmem:[%s356_s6] sm:$0x1] %v221_v60 }

</bundles_post_ra>
